<compile_context>
chip_gen: v6e
topology: v6e:2x2x1
jax: 0.10.0
libtpu: 0.0.40
codegen_flags: <defaults>
</compile_context>

<pallas_src>
import functools

import jax
import jax.numpy as jnp
from jax import lax
from jax.experimental import pallas as pl
from jax.experimental.pallas import tpu as pltpu

_LANES = 128


def _cdiv(a: int, b: int) -> int:
    return (a + b - 1) // b


def _round_up(a: int, b: int) -> int:
    return _cdiv(a, b) * b


def _choose_tile_m(m_rows: int, n_feat: int, pred_itemsize: int,
                   tgt_itemsize: int, vmem_budget_bytes: int) -> int:
    """Largest 128-multiple row tile whose double-buffered (lane-padded) input
    blocks plus in-kernel f32 intermediates fit the VMEM budget."""
    pred_cols = _round_up(max(n_feat, 1), _LANES)   # VMEM lane padding
    tgt_cols = _round_up(6, _LANES)
    per_row = 2 * pred_cols * pred_itemsize + 2 * tgt_cols * tgt_itemsize
    # transposed f32 blocks + assorted (k, tile_m) temporaries (generous).
    per_row += 4 * (3 * _round_up(n_feat, 8) + 48)
    tile = vmem_budget_bytes // per_row
    tile = max(_LANES, (tile // _LANES) * _LANES)
    tile = min(tile, 16384, _round_up(m_rows, _LANES))
    return int(tile)


def _make_loss_kernel(n_rows: int, tile_m: int, num_classes: int,
                      needs_mask: bool):
    """Blocks: pred (tile_m, 5+C), target (tile_m, 6) in natural layout."""
    n_chunks = tile_m // _LANES

    def kernel(pred_ref, tgt_ref, out_ref):
        # In-kernel layout swap to lane-dense (features, rows); cast to f32
        # first so the transpose always runs on the 32-bit path.
        pt = jnp.transpose(pred_ref[...].astype(jnp.float32))   # (5+C, TM)
        tt = jnp.transpose(tgt_ref[...].astype(jnp.float32))    # (6, TM)

        conf_t = tt[4:5, :]                                      # (1, TM)
        # Exact ==0 / >0 comparisons mirror the PyTorch masks.
        w_obj = (conf_t > 0.0).astype(jnp.float32)
        w_noobj = (conf_t == 0.0).astype(jnp.float32)

        # ---- xy: MSE(sigmoid(pred_xy), gt_xy) over obj rows ----
        dxy = jax.nn.sigmoid(pt[0:2, :]) - tt[0:2, :]
        xy_row = jnp.sum(dxy * dxy, axis=0, keepdims=True) * w_obj

        # ---- wh: SmoothL1(pred_wh, log(gt_wh + 1e-9)) over obj rows ----
        dwh = pt[2:4, :] - jnp.log(tt[2:4, :] + 1e-9)
        awh = jnp.abs(dwh)
        sl1 = jnp.where(awh < 1.0, 0.5 * dwh * dwh, awh - 0.5)
        wh_row = jnp.sum(sl1, axis=0, keepdims=True) * w_obj

        # ---- confidence BCE-with-logits (shared relu / softplus terms) ----
        x = pt[4:5, :]
        relu_x = jnp.maximum(x, 0.0)
        softplus_negabs = jnp.log1p(jnp.exp(-jnp.abs(x)))
        pos_row = (relu_x - x * conf_t + softplus_negabs) * w_obj
        neg_row = (relu_x + softplus_negabs) * w_noobj

        # ---- class cross-entropy over obj rows (column-wise logsumexp) ----
        logits = pt[5:, :]                                       # (C, TM)
        m = jnp.max(logits, axis=0, keepdims=True)
        lse = m + jnp.log(jnp.sum(jnp.exp(logits - m), axis=0, keepdims=True))
        cls_id = tt[5:6, :].astype(jnp.int32)
        row_idx = lax.broadcasted_iota(jnp.int32, (num_classes, tile_m), 0)
        correct = jnp.sum(jnp.where(row_idx == cls_id, logits, 0.0),
                          axis=0, keepdims=True)
        cls_row = (lse - correct) * w_obj

        rows = [xy_row, wh_row, pos_row, neg_row, cls_row]

        if needs_mask:
            # Ragged tail columns hold unspecified data; per-column math stays
            # column-local, so selecting 0 here keeps garbage out of the sums.
            base = pl.program_id(0) * tile_m
            lane = lax.broadcasted_iota(jnp.int32, (1, tile_m), 1)
            valid = (base + lane) < n_rows
            rows = [jnp.where(valid, r, 0.0) for r in rows]

        # ---- fold each (1, TM) partial down to one 128-lane vreg (VPU) ----
        def fold(row):
            acc = row[:, 0:_LANES]
            for c in range(1, n_chunks):
                acc = acc + row[:, c * _LANES:(c + 1) * _LANES]
            return acc

        out_ref[...] = jnp.concatenate(
            [fold(r) for r in rows] + [jnp.zeros((3, _LANES), jnp.float32)],
            axis=0)                                              # (8, 128)

    return kernel


@functools.partial(jax.jit, static_argnames=("lambda_coord", "lambda_noobj"))
def yolo_loss(pred_tensor, target_tensor, lambda_coord=5.0, lambda_noobj=0.5):
    """Mirror of Loss.forward: returns (total_loss, dict_of_component_losses)."""
    batch_size = pred_tensor.shape[0]
    n_feat = pred_tensor.shape[-1]            # 5 + C
    num_classes = n_feat - 5

    # Natural layout, no transpose / no pad: reshapes of contiguous dims only.
    pred2 = pred_tensor.reshape(-1, n_feat)   # (M, 5+C)
    tgt2 = target_tensor.reshape(-1, 6)       # (M, 6)
    m_rows = pred2.shape[0]

    tile_m = _choose_tile_m(m_rows, n_feat,
                            pred2.dtype.itemsize, tgt2.dtype.itemsize,
                            vmem_budget_bytes=24 * 1024 * 1024)
    num_tiles = _cdiv(m_rows, tile_m)
    needs_mask = (num_tiles * tile_m) != m_rows

    kernel = _make_loss_kernel(m_rows, tile_m, num_classes, needs_mask)

    partials = pl.pallas_call(
        kernel,
        out_shape=jax.ShapeDtypeStruct((num_tiles, 8, _LANES), jnp.float32),
        grid_spec=pltpu.PrefetchScalarGridSpec(
            num_scalar_prefetch=0,
            grid=(num_tiles,),
            in_specs=[
                pl.BlockSpec((tile_m, n_feat), lambda i: (i, 0)),
                pl.BlockSpec((tile_m, 6), lambda i: (i, 0)),
            ],
            out_specs=pl.BlockSpec((None, 8, _LANES), lambda i: (i, 0, 0)),
        ),
        compiler_params=pltpu.CompilerParams(
            dimension_semantics=("parallel",),
            vmem_limit_bytes=32 * 1024 * 1024),
    )(pred2, tgt2)

    sums = jnp.sum(partials[:, :5, :], axis=(0, 2))      # (5,) raw sums

    inv_b = 1.0 / batch_size
    xy_loss = lambda_coord * sums[0] * inv_b
    wh_loss = lambda_coord * sums[1] * inv_b
    conf_posi_loss = sums[2] * inv_b
    conf_neg_loss = lambda_noobj * sums[3] * inv_b
    class_loss = sums[4] * inv_b
    total_loss = xy_loss + wh_loss + conf_neg_loss + conf_posi_loss + class_loss
    return total_loss, {
        "xy_loss": xy_loss,
        "wh_loss": wh_loss,
        "conf_posi_loss": conf_posi_loss,
        "conf_neg_loss": conf_neg_loss,
        "class_loss": class_loss,
    }


if __name__ == "__main__":
    # Small deterministic example: B=2, S=4, anchors=5, classes=3 -> N=8.
    B, S, A, C = 2, 4, 5, 3
    N = 5 + C
    key = jax.random.PRNGKey(0)
    k_pred, k_conf, k_xy, k_wh, k_cls = jax.random.split(key, 5)

    pred = jax.random.normal(k_pred, (B, S, S, A, N), dtype=jnp.float32)

    # YOLO-style target: conf in {0,1}, xy offsets in (0,1), positive wh, class id.
    conf = (jax.random.uniform(k_conf, (B, S, S, A)) > 0.7).astype(jnp.float32)
    xy = jax.random.uniform(k_xy, (B, S, S, A, 2), minval=0.05, maxval=0.95)
    wh = jax.random.uniform(k_wh, (B, S, S, A, 2), minval=0.1, maxval=3.0)
    cls_id = jax.random.randint(k_cls, (B, S, S, A, 1), 0, C).astype(jnp.float32)
    target = jnp.concatenate([xy, wh, conf[..., None], cls_id], axis=-1)

    total, parts = yolo_loss(pred, target)
    jax.block_until_ready(total)
    jax.block_until_ready(parts)
    print("KERNEL_OK")
</pallas_src>

<mosaic_0001>
module attributes {stable_mosaic.version = 11 : i64} {
  func.func @kernel(%arg0: i32, %arg1: memref<256x8xf32, #tpu.memory_space<vmem>>, %arg2: memref<256x6xf32, #tpu.memory_space<vmem>>, %arg3: memref<1x8x128xf32, #tpu.memory_space<vmem>>) attributes {dimension_semantics = [#tpu.dimension_semantics<parallel>], iteration_bounds = array<i64: 1>, scalar_prefetch = 0 : i64, scratch_operands = 0 : i64, tpu.core_type = #tpu.core_type<tc>, window_params = [{transform_indices = @transform_0, window_bounds = array<i64: 256, 8>}, {transform_indices = @transform_1, window_bounds = array<i64: 256, 6>}, {transform_indices = @transform_2, window_bounds = array<i64: 1, 8, 128>}]} {
    %c0 = arith.constant 0 : index
    %c0_0 = arith.constant 0 : index
    %0 = vector.load %arg1[%c0, %c0_0] : memref<256x8xf32, #tpu.memory_space<vmem>>, vector<256x8xf32>
    %1 = tpu.transpose %0, [1, 0] : vector<256x8xf32> -> vector<8x256xf32>
    %c0_1 = arith.constant 0 : index
    %c0_2 = arith.constant 0 : index
    %2 = vector.load %arg2[%c0_1, %c0_2] : memref<256x6xf32, #tpu.memory_space<vmem>>, vector<256x6xf32>
    %3 = tpu.transpose %2, [1, 0] : vector<256x6xf32> -> vector<6x256xf32>
    %4 = vector.extract_strided_slice %3 {offsets = [4, 0], sizes = [1, 256], strides = [1, 1]} : vector<6x256xf32> to vector<1x256xf32>
    %cst = arith.constant 0.000000e+00 : f32
    %5 = vector.broadcast %cst : f32 to vector<1x256xf32>
    %6 = arith.cmpf ogt, %4, %5 : vector<1x256xf32>
    %7 = arith.extui %6 : vector<1x256xi1> to vector<1x256xi32>
    %8 = arith.sitofp %7 : vector<1x256xi32> to vector<1x256xf32>
    %cst_3 = arith.constant 0.000000e+00 : f32
    %9 = vector.broadcast %cst_3 : f32 to vector<1x256xf32>
    %10 = arith.cmpf oeq, %4, %9 : vector<1x256xf32>
    %11 = arith.extui %10 : vector<1x256xi1> to vector<1x256xi32>
    %12 = arith.sitofp %11 : vector<1x256xi32> to vector<1x256xf32>
    %13 = vector.extract_strided_slice %1 {offsets = [0, 0], sizes = [2, 256], strides = [1, 1]} : vector<8x256xf32> to vector<2x256xf32>
    %14 = arith.negf %13 : vector<2x256xf32>
    %15 = math.exp %14 : vector<2x256xf32>
    %cst_4 = arith.constant 1.000000e+00 : f32
    %16 = vector.broadcast %cst_4 : f32 to vector<2x256xf32>
    %17 = arith.addf %16, %15 : vector<2x256xf32>
    %18 = arith.divf %16, %17 : vector<2x256xf32>
    %19 = vector.extract_strided_slice %3 {offsets = [0, 0], sizes = [2, 256], strides = [1, 1]} : vector<6x256xf32> to vector<2x256xf32>
    %20 = arith.subf %18, %19 : vector<2x256xf32>
    %21 = arith.mulf %20, %20 : vector<2x256xf32>
    %cst_5 = arith.constant dense<0.000000e+00> : vector<256xf32>
    %22 = vector.multi_reduction <add>, %21, %cst_5 [0] : vector<2x256xf32> to vector<256xf32>
    %23 = vector.shape_cast %22 : vector<256xf32> to vector<1x256xf32>
    %24 = arith.mulf %23, %8 : vector<1x256xf32>
    %25 = vector.extract_strided_slice %1 {offsets = [2, 0], sizes = [2, 256], strides = [1, 1]} : vector<8x256xf32> to vector<2x256xf32>
    %26 = vector.extract_strided_slice %3 {offsets = [2, 0], sizes = [2, 256], strides = [1, 1]} : vector<6x256xf32> to vector<2x256xf32>
    %cst_6 = arith.constant 9.99999971E-10 : f32
    %27 = vector.broadcast %cst_6 : f32 to vector<2x256xf32>
    %28 = arith.addf %26, %27 : vector<2x256xf32>
    %29 = math.log %28 : vector<2x256xf32>
    %30 = arith.subf %25, %29 : vector<2x256xf32>
    %31 = math.absf %30 : vector<2x256xf32>
    %cst_7 = arith.constant 1.000000e+00 : f32
    %32 = vector.broadcast %cst_7 : f32 to vector<2x256xf32>
    %33 = arith.cmpf olt, %31, %32 : vector<2x256xf32>
    %cst_8 = arith.constant 5.000000e-01 : f32
    %34 = vector.broadcast %cst_8 : f32 to vector<2x256xf32>
    %35 = arith.mulf %34, %30 : vector<2x256xf32>
    %36 = arith.mulf %35, %30 : vector<2x256xf32>
    %cst_9 = arith.constant 5.000000e-01 : f32
    %37 = vector.broadcast %cst_9 : f32 to vector<2x256xf32>
    %38 = arith.subf %31, %37 : vector<2x256xf32>
    %39 = arith.select %33, %36, %38 : vector<2x256xi1>, vector<2x256xf32>
    %cst_10 = arith.constant dense<0.000000e+00> : vector<256xf32>
    %40 = vector.multi_reduction <add>, %39, %cst_10 [0] : vector<2x256xf32> to vector<256xf32>
    %41 = vector.shape_cast %40 : vector<256xf32> to vector<1x256xf32>
    %42 = arith.mulf %41, %8 : vector<1x256xf32>
    %43 = vector.extract_strided_slice %1 {offsets = [4, 0], sizes = [1, 256], strides = [1, 1]} : vector<8x256xf32> to vector<1x256xf32>
    %cst_11 = arith.constant 0.000000e+00 : f32
    %44 = vector.broadcast %cst_11 : f32 to vector<1x256xf32>
    %45 = arith.maximumf %43, %44 : vector<1x256xf32>
    %46 = math.absf %43 : vector<1x256xf32>
    %cst_12 = arith.constant 0.000000e+00 : f32
    %47 = vector.broadcast %cst_12 : f32 to vector<1x256xf32>
    %48 = arith.subf %47, %46 : vector<1x256xf32>
    %49 = math.exp %48 : vector<1x256xf32>
    %50 = math.log1p %49 : vector<1x256xf32>
    %51 = arith.mulf %43, %4 : vector<1x256xf32>
    %52 = arith.subf %45, %51 : vector<1x256xf32>
    %53 = arith.addf %52, %50 : vector<1x256xf32>
    %54 = arith.mulf %53, %8 : vector<1x256xf32>
    %55 = arith.addf %45, %50 : vector<1x256xf32>
    %56 = arith.mulf %55, %12 : vector<1x256xf32>
    %57 = vector.extract_strided_slice %1 {offsets = [5, 0], sizes = [3, 256], strides = [1, 1]} : vector<8x256xf32> to vector<3x256xf32>
    %cst_13 = arith.constant dense<0xFF800000> : vector<256xf32>
    %58 = vector.multi_reduction <maximumf>, %57, %cst_13 [0] : vector<3x256xf32> to vector<256xf32>
    %59 = vector.shape_cast %58 : vector<256xf32> to vector<1x256xf32>
    %60 = vector.broadcast %59 : vector<1x256xf32> to vector<3x256xf32>
    %61 = arith.subf %57, %60 : vector<3x256xf32>
    %62 = math.exp %61 : vector<3x256xf32>
    %cst_14 = arith.constant dense<0.000000e+00> : vector<256xf32>
    %63 = vector.multi_reduction <add>, %62, %cst_14 [0] : vector<3x256xf32> to vector<256xf32>
    %64 = vector.shape_cast %63 : vector<256xf32> to vector<1x256xf32>
    %65 = math.log %64 : vector<1x256xf32>
    %66 = arith.addf %59, %65 : vector<1x256xf32>
    %67 = vector.extract_strided_slice %3 {offsets = [5, 0], sizes = [1, 256], strides = [1, 1]} : vector<6x256xf32> to vector<1x256xf32>
    %68 = arith.fptosi %67 : vector<1x256xf32> to vector<1x256xi32>
    %69 = tpu.iota {dimensions = array<i32: 0>} : vector<3x256xi32>
    %70 = vector.broadcast %68 : vector<1x256xi32> to vector<3x256xi32>
    %71 = arith.cmpi eq, %69, %70 : vector<3x256xi32>
    %cst_15 = arith.constant 0.000000e+00 : f32
    %72 = vector.broadcast %cst_15 : f32 to vector<3x256xf32>
    %73 = arith.select %71, %57, %72 : vector<3x256xi1>, vector<3x256xf32>
    %cst_16 = arith.constant dense<0.000000e+00> : vector<256xf32>
    %74 = vector.multi_reduction <add>, %73, %cst_16 [0] : vector<3x256xf32> to vector<256xf32>
    %75 = vector.shape_cast %74 : vector<256xf32> to vector<1x256xf32>
    %76 = arith.subf %66, %75 : vector<1x256xf32>
    %77 = arith.mulf %76, %8 : vector<1x256xf32>
    %c256_i32 = arith.constant 256 : i32
    %78 = arith.muli %arg0, %c256_i32 : i32
    %79 = tpu.iota {dimensions = array<i32: 1>} : vector<1x256xi32>
    %80 = vector.broadcast %78 : i32 to vector<1x256xi32>
    %81 = arith.addi %80, %79 : vector<1x256xi32>
    %c160_i32 = arith.constant 160 : i32
    %82 = vector.broadcast %c160_i32 : i32 to vector<1x256xi32>
    %83 = arith.cmpi slt, %81, %82 : vector<1x256xi32>
    %cst_17 = arith.constant 0.000000e+00 : f32
    %84 = vector.broadcast %cst_17 : f32 to vector<1x256xf32>
    %85 = arith.select %83, %24, %84 : vector<1x256xi1>, vector<1x256xf32>
    %cst_18 = arith.constant 0.000000e+00 : f32
    %86 = vector.broadcast %cst_18 : f32 to vector<1x256xf32>
    %87 = arith.select %83, %42, %86 : vector<1x256xi1>, vector<1x256xf32>
    %cst_19 = arith.constant 0.000000e+00 : f32
    %88 = vector.broadcast %cst_19 : f32 to vector<1x256xf32>
    %89 = arith.select %83, %54, %88 : vector<1x256xi1>, vector<1x256xf32>
    %cst_20 = arith.constant 0.000000e+00 : f32
    %90 = vector.broadcast %cst_20 : f32 to vector<1x256xf32>
    %91 = arith.select %83, %56, %90 : vector<1x256xi1>, vector<1x256xf32>
    %cst_21 = arith.constant 0.000000e+00 : f32
    %92 = vector.broadcast %cst_21 : f32 to vector<1x256xf32>
    %93 = arith.select %83, %77, %92 : vector<1x256xi1>, vector<1x256xf32>
    %94 = vector.extract_strided_slice %85 {offsets = [0, 0], sizes = [1, 128], strides = [1, 1]} : vector<1x256xf32> to vector<1x128xf32>
    %95 = vector.extract_strided_slice %85 {offsets = [0, 128], sizes = [1, 128], strides = [1, 1]} : vector<1x256xf32> to vector<1x128xf32>
    %96 = arith.addf %94, %95 : vector<1x128xf32>
    %97 = vector.extract_strided_slice %87 {offsets = [0, 0], sizes = [1, 128], strides = [1, 1]} : vector<1x256xf32> to vector<1x128xf32>
    %98 = vector.extract_strided_slice %87 {offsets = [0, 128], sizes = [1, 128], strides = [1, 1]} : vector<1x256xf32> to vector<1x128xf32>
    %99 = arith.addf %97, %98 : vector<1x128xf32>
    %100 = vector.extract_strided_slice %89 {offsets = [0, 0], sizes = [1, 128], strides = [1, 1]} : vector<1x256xf32> to vector<1x128xf32>
    %101 = vector.extract_strided_slice %89 {offsets = [0, 128], sizes = [1, 128], strides = [1, 1]} : vector<1x256xf32> to vector<1x128xf32>
    %102 = arith.addf %100, %101 : vector<1x128xf32>
    %103 = vector.extract_strided_slice %91 {offsets = [0, 0], sizes = [1, 128], strides = [1, 1]} : vector<1x256xf32> to vector<1x128xf32>
    %104 = vector.extract_strided_slice %91 {offsets = [0, 128], sizes = [1, 128], strides = [1, 1]} : vector<1x256xf32> to vector<1x128xf32>
    %105 = arith.addf %103, %104 : vector<1x128xf32>
    %106 = vector.extract_strided_slice %93 {offsets = [0, 0], sizes = [1, 128], strides = [1, 1]} : vector<1x256xf32> to vector<1x128xf32>
    %107 = vector.extract_strided_slice %93 {offsets = [0, 128], sizes = [1, 128], strides = [1, 1]} : vector<1x256xf32> to vector<1x128xf32>
    %108 = arith.addf %106, %107 : vector<1x128xf32>
    %cst_22 = arith.constant 0.000000e+00 : f32
    %109 = vector.broadcast %cst_22 : f32 to vector<3x128xf32>
    %110 = tpu.concatenate %96, %99, %102, %105, %108, %109 in 0 : vector<1x128xf32>, vector<1x128xf32>, vector<1x128xf32>, vector<1x128xf32>, vector<1x128xf32>, vector<3x128xf32> -> vector<8x128xf32>
    %c0_23 = arith.constant 0 : index
    %c0_24 = arith.constant 0 : index
    %c0_25 = arith.constant 0 : index
    %111 = vector.load %arg3[%c0_23, %c0_24, %c0_25] : memref<1x8x128xf32, #tpu.memory_space<vmem>>, vector<1x8x128xf32>
    %112 = vector.shape_cast %111 : vector<1x8x128xf32> to vector<8x128xf32>
    %113 = vector.shape_cast %110 : vector<8x128xf32> to vector<1x8x128xf32>
    tpu.vector_store %arg3[%c0_23, %c0_24, %c0_25], %113 {strides = array<i32>} : memref<1x8x128xf32, #tpu.memory_space<vmem>>, vector<1x8x128xf32>,
    return
  }
  func.func @transform_0(%arg0: i32) -> (i32, i32) {
    %c0_i32 = arith.constant 0 : i32
    %c0_i32_0 = arith.constant 0 : i32
    return %arg0, %c0_i32 : i32, i32
  }
  func.func @transform_1(%arg0: i32) -> (i32, i32) {
    %c0_i32 = arith.constant 0 : i32
    %c0_i32_0 = arith.constant 0 : i32
    return %arg0, %c0_i32 : i32, i32
  }
  func.func @transform_2(%arg0: i32) -> (i32, i32, i32) {
    %c0_i32 = arith.constant 0 : i32
    %c0_i32_0 = arith.constant 0 : i32
    %c0_i32_1 = arith.constant 0 : i32
    return %arg0, %c0_i32, %c0_i32_0 : i32, i32, i32
  }
}

</mosaic_0001>

<bundles_post_ra>
// kernel: yolo_loss.1
= control target key start
LH: loop header
LB: loop body
LE: loop exit
PB: predicated region body
PF: predicated region fallthrough
CT: control target
= control target key end

     0   :  { %vm330_vm0 = vcmask 1047557   ;;  %vm357_vm1 = vcmask 1042432   ;;  %vm231_vm2 = vcmask 1041408   ;;  %vm454_vm14 = vcmask 1040384   ;;  %s814_s0 = inlined_call_operand.vmem [shape: f32[160,8], index: 0, kind: input, shape index: {}]   ;;  %s815_s1 = inlined_call_operand.vmem [shape: f32[160,6], index: 1, kind: input, shape index: {}]   ;;  %s816_s2 = inlined_call_operand.vmem [shape: f32[1,8,128], index: 2, kind: output, shape index: {}]  }
   0x1   :  { %v27_v0 = vld [vmem:[%s814_s0 + $0x80] sm:$0xff]  ;;  %v28_v2 = vld [vmem:[%s814_s0 + $0x88] sm:$0xff]  ;;  %v29_v4 = vld [vmem:[%s814_s0 + $0x90] sm:$0xff]  ;;  %vm458_vm15 = vcmask 1043456  }
   0x2   :  { %v11_v1 = vld [vmem:[%s814_s0] sm:$0xff]  ;;  %75 = vxpose.xlu1.b32.start [1/16] (narrow) %v27_v0, 8  ;;  %v12_v3 = vld [vmem:[%s814_s0 + $0x8] sm:$0xff]  ;;  %v13_v5 = vld [vmem:[%s814_s0 + $0x10] sm:$0xff] }
   0x3   :  { %43 = vxpose.xlu0.b32.start [1/16] (narrow) %v11_v1, 8  ;;  %v30_v6 = vld [vmem:[%s814_s0 + $0x98] sm:$0xff]  ;;  %v31_v8 = vld [vmem:[%s814_s0 + $0xa0] sm:$0xff]  ;;  %v32_v10 = vld [vmem:[%s814_s0 + $0xa8] sm:$0xff] }
   0x4   :  { %v14_v7 = vld [vmem:[%s814_s0 + $0x18] sm:$0xff]  ;;  %v15_v9 = vld [vmem:[%s814_s0 + $0x20] sm:$0xff]  ;;  %v16_v11 = vld [vmem:[%s814_s0 + $0x28] sm:$0xff] }
   0x5   :  { %v33_v12 = vld [vmem:[%s814_s0 + $0xb0] sm:$0xff]  ;;  %v34_v14 = vld [vmem:[%s814_s0 + $0xb8] sm:$0xff]  ;;  %v35_v16 = vld [vmem:[%s814_s0 + $0xc0] sm:$0xff] }
   0x6   :  { %76 = vxpose.xlu1.b32.cont [2/16] (narrow) %v28_v2, 8  ;;  %v17_v13 = vld [vmem:[%s814_s0 + $0x30] sm:$0xff]  ;;  %v18_v15 = vld [vmem:[%s814_s0 + $0x38] sm:$0xff]  ;;  %v19_v17 = vld [vmem:[%s814_s0 + $0x40] sm:$0xff] }
   0x7   :  { %44 = vxpose.xlu0.b32.cont [2/16] (narrow) %v12_v3, 8  ;;  %v36_v18 = vld [vmem:[%s814_s0 + $0xc8] sm:$0xff]  ;;  %v37_v20 = vld [vmem:[%s814_s0 + $0xd0] sm:$0xff]  ;;  %v38_v22 = vld [vmem:[%s814_s0 + $0xd8] sm:$0xff] }
   0x8   :  { %v20_v19 = vld [vmem:[%s814_s0 + $0x48] sm:$0xff]  ;;  %v21_v21 = vld [vmem:[%s814_s0 + $0x50] sm:$0xff]  ;;  %v22_v23 = vld [vmem:[%s814_s0 + $0x58] sm:$0xff] }
   0x9   :  { %v39_v24 = vld [vmem:[%s814_s0 + $0xe0] sm:$0xff]  ;;  %v40_v26 = vld [vmem:[%s814_s0 + $0xe8] sm:$0xff]  ;;  %v41_v28 = vld [vmem:[%s814_s0 + $0xf0] sm:$0xff] }
   0xa   :  { %77 = vxpose.xlu1.b32.cont [3/16] (narrow) %v29_v4, 8  ;;  %v23_v25 = vld [vmem:[%s814_s0 + $0x60] sm:$0xff]  ;;  %v24_v27 = vld [vmem:[%s814_s0 + $0x68] sm:$0xff]  ;;  %v25_v29 = vld [vmem:[%s814_s0 + $0x70] sm:$0xff] }
   0xb   :  { %45 = vxpose.xlu0.b32.cont [3/16] (narrow) %v13_v5, 8  ;;  %v42_v30 = vld [vmem:[%s814_s0 + $0xf8] sm:$0xff]  ;;  %v107_v32 = vld [vmem:[%s815_s1] sm:$0xff]  ;;  %v108_v34 = vld [vmem:[%s815_s1 + $0x8] sm:$0xff] }
   0xc   :  { %v26_v31 = vld [vmem:[%s814_s0 + $0x78] sm:$0xff]  ;;  %v123_v33 = vld [vmem:[%s815_s1 + $0x80] sm:$0xff]  ;;  %v124_v35 = vld [vmem:[%s815_s1 + $0x88] sm:$0xff] }
   0xd   :  { %v109_v36 = vld [vmem:[%s815_s1 + $0x10] sm:$0xff]  ;;  %v110_v38 = vld [vmem:[%s815_s1 + $0x18] sm:$0xff]  ;;  %v111_v40 = vld [vmem:[%s815_s1 + $0x20] sm:$0xff] }
   0xe   :  { %78 = vxpose.xlu1.b32.cont [4/16] (narrow) %v30_v6, 8  ;;  %v125_v37 = vld [vmem:[%s815_s1 + $0x90] sm:$0xff]  ;;  %v126_v39 = vld [vmem:[%s815_s1 + $0x98] sm:$0xff]  ;;  %v127_v41 = vld [vmem:[%s815_s1 + $0xa0] sm:$0xff] }
   0xf   :  { %46 = vxpose.xlu0.b32.cont [4/16] (narrow) %v14_v7, 8  ;;  %v112_v42 = vld [vmem:[%s815_s1 + $0x28] sm:$0xff]  ;;  %v113_v44 = vld [vmem:[%s815_s1 + $0x30] sm:$0xff]  ;;  %v114_v46 = vld [vmem:[%s815_s1 + $0x38] sm:$0xff] }
  0x10   :  { %v128_v43 = vld [vmem:[%s815_s1 + $0xa8] sm:$0xff]  ;;  %v129_v45 = vld [vmem:[%s815_s1 + $0xb0] sm:$0xff]  ;;  %v130_v47 = vld [vmem:[%s815_s1 + $0xb8] sm:$0xff] }
  0x11   :  { %v115_v48 = vld [vmem:[%s815_s1 + $0x40] sm:$0xff]  ;;  %v116_v50 = vld [vmem:[%s815_s1 + $0x48] sm:$0xff]  ;;  %v117_v52 = vld [vmem:[%s815_s1 + $0x50] sm:$0xff] }
  0x12   :  { %79 = vxpose.xlu1.b32.cont [5/16] (narrow) %v31_v8, 8  ;;  %v131_v49 = vld [vmem:[%s815_s1 + $0xc0] sm:$0xff]  ;;  %v132_v51 = vld [vmem:[%s815_s1 + $0xc8] sm:$0xff]  ;;  %v133_v53 = vld [vmem:[%s815_s1 + $0xd0] sm:$0xff] }
  0x13   :  { %47 = vxpose.xlu0.b32.cont [5/16] (narrow) %v15_v9, 8  ;;  %v118_v54 = vld [vmem:[%s815_s1 + $0x58] sm:$0xff]  ;;  %v119_v56 = vld [vmem:[%s815_s1 + $0x60] sm:$0xff]  ;;  %v120_v58 = vld [vmem:[%s815_s1 + $0x68] sm:$0xff] }
  0x14   :  { %v134_v55 = vld [vmem:[%s815_s1 + $0xd8] sm:$0xff]  ;;  %v135_v57 = vld [vmem:[%s815_s1 + $0xe0] sm:$0xff]  ;;  %v136_v59 = vld [vmem:[%s815_s1 + $0xe8] sm:$0xff] }
  0x15   :  { %v121_v60 = vld [vmem:[%s815_s1 + $0x70] sm:$0xff]  ;;  %v122_v62 = vld [vmem:[%s815_s1 + $0x78] sm:$0xff] }
  0x16   :  { %80 = vxpose.xlu1.b32.cont [6/16] (narrow) %v32_v10, 8  ;;  %v137_v61 = vld [vmem:[%s815_s1 + $0xf0] sm:$0xff]  ;;  %v138_v63 = vld [vmem:[%s815_s1 + $0xf8] sm:$0xff] }
  0x17   :  { %48 = vxpose.xlu0.b32.cont [6/16] (narrow) %v16_v11, 8 }
  0x1a   :  { %81 = vxpose.xlu1.b32.cont [7/16] (narrow) %v33_v12, 8 }
  0x1b   :  { %49 = vxpose.xlu0.b32.cont [7/16] (narrow) %v17_v13, 8 }
  0x1e   :  { %82 = vxpose.xlu1.b32.cont [8/16] (narrow) %v34_v14, 8 }
  0x1f   :  { %50 = vxpose.xlu0.b32.cont [8/16] (narrow) %v18_v15, 8 }
  0x22   :  { %83 = vxpose.xlu1.b32.cont [9/16] (narrow) %v35_v16, 8 }
  0x23   :  { %51 = vxpose.xlu0.b32.cont [9/16] (narrow) %v19_v17, 8 }
  0x26   :  { %84 = vxpose.xlu1.b32.cont [10/16] (narrow) %v36_v18, 8 }
  0x27   :  { %52 = vxpose.xlu0.b32.cont [10/16] (narrow) %v20_v19, 8 }
  0x2a   :  { %85 = vxpose.xlu1.b32.cont [11/16] (narrow) %v37_v20, 8 }
  0x2b   :  { %53 = vxpose.xlu0.b32.cont [11/16] (narrow) %v21_v21, 8 }
  0x2e   :  { %86 = vxpose.xlu1.b32.cont [12/16] (narrow) %v38_v22, 8 }
  0x2f   :  { %54 = vxpose.xlu0.b32.cont [12/16] (narrow) %v22_v23, 8 }
  0x32   :  { %87 = vxpose.xlu1.b32.cont [13/16] (narrow) %v39_v24, 8 }
  0x33   :  { %55 = vxpose.xlu0.b32.cont [13/16] (narrow) %v23_v25, 8 }
  0x36   :  { %88 = vxpose.xlu1.b32.cont [14/16] (narrow) %v40_v26, 8 }
  0x37   :  { %56 = vxpose.xlu0.b32.cont [14/16] (narrow) %v24_v27, 8 }
  0x3a   :  { %89 = vxpose.xlu1.b32.cont [15/16] (narrow) %v41_v28, 8 }
  0x3b   :  { %57 = vxpose.xlu0.b32.cont [15/16] (narrow) %v25_v29, 8 }
  0x3e   :  { %90 = vxpose.xlu1.b32.end [16/16] (narrow) %v42_v30, 8 }
  0x3f   :  { %58 = vxpose.xlu0.b32.end [16/16] (narrow) %v26_v31, 8 }
  0x42   :  { %139 = vxpose.xlu1.b32.start [1/16] (narrow) %v107_v32, 8 }
  0x43   :  { %171 = vxpose.xlu0.b32.start [1/16] (narrow) %v123_v33, 8 }
  0x46   :  { %140 = vxpose.xlu1.b32.cont [2/16] (narrow) %v108_v34, 8 }
  0x47   :  { %172 = vxpose.xlu0.b32.cont [2/16] (narrow) %v124_v35, 8 }
  0x4a   :  { %141 = vxpose.xlu1.b32.cont [3/16] (narrow) %v109_v36, 8 }
  0x4b   :  { %173 = vxpose.xlu0.b32.cont [3/16] (narrow) %v125_v37, 8  ;;  %v380_v37 = vlaneseq }
  0x4e   :  { %142 = vxpose.xlu1.b32.cont [4/16] (narrow) %v110_v38, 8 }
  0x4f   :  { %174 = vxpose.xlu0.b32.cont [4/16] (narrow) %v126_v39, 8 }
  0x52   :  { %143 = vxpose.xlu1.b32.cont [5/16] (narrow) %v111_v40, 8 }
  0x53   :  { %175 = vxpose.xlu0.b32.cont [5/16] (narrow) %v127_v41, 8 }
  0x56   :  { %144 = vxpose.xlu1.b32.cont [6/16] (narrow) %v112_v42, 8  ;;  %v381_v42 = vshrl.u32 %v380_v37, 7 }
  0x57   :  { %176 = vxpose.xlu0.b32.cont [6/16] (narrow) %v128_v43, 8 }
  0x5a   :  { %145 = vxpose.xlu1.b32.cont [7/16] (narrow) %v113_v44, 8 }
  0x5b   :  { %177 = vxpose.xlu0.b32.cont [7/16] (narrow) %v129_v45, 8 }
  0x5e   :  { %146 = vxpose.xlu1.b32.cont [8/16] (narrow) %v114_v46, 8 }
  0x5f   :  { %178 = vxpose.xlu0.b32.cont [8/16] (narrow) %v130_v47, 8 }
  0x62   :  { %147 = vxpose.xlu1.b32.cont [9/16] (narrow) %v115_v48, 8 }
  0x63   :  { %179 = vxpose.xlu0.b32.cont [9/16] (narrow) %v131_v49, 8 }
  0x66   :  { %148 = vxpose.xlu1.b32.cont [10/16] (narrow) %v116_v50, 8  ;;  %v384_v50 = vsub.s32 5, %v381_v42 }
  0x67   :  { %180 = vxpose.xlu0.b32.cont [10/16] (narrow) %v132_v51, 8 }
  0x6a   :  { %149 = vxpose.xlu1.b32.cont [11/16] (narrow) %v117_v52, 8 }
  0x6b   :  { %181 = vxpose.xlu0.b32.cont [11/16] (narrow) %v133_v53, 8 }
  0x6e   :  { %150 = vxpose.xlu1.b32.cont [12/16] (narrow) %v118_v54, 8 }
  0x6f   :  { %182 = vxpose.xlu0.b32.cont [12/16] (narrow) %v134_v55, 8 }
  0x72   :  { %151 = vxpose.xlu1.b32.cont [13/16] (narrow) %v119_v56, 8 }
  0x73   :  { %183 = vxpose.xlu0.b32.cont [13/16] (narrow) %v135_v57, 8 }
  0x76   :  { %152 = vxpose.xlu1.b32.cont [14/16] (narrow) %v120_v58, 8 }
  0x77   :  { %184 = vxpose.xlu0.b32.cont [14/16] (narrow) %v136_v59, 8 }
  0x7a   :  { %153 = vxpose.xlu1.b32.cont [15/16] (narrow) %v121_v60, 8 }
  0x7b   :  { %185 = vxpose.xlu0.b32.cont [15/16] (narrow) %v137_v61, 8 }
  0x7e   :  { %154 = vxpose.xlu1.b32.end [16/16] (narrow) %v122_v62, 8  ;;  %v716_v0 = vpop.trf.xlu1 }
  0x7f   :  { %186 = vxpose.xlu0.b32.end [16/16] (narrow) %v138_v63, 8  ;;  %v338_v1 = vsel %vm330_vm0, %v716_v0, -inf  ;;  %v719_v2 = vpop.trf.xlu0  ;;  %v472_v15 = vmul.f32 -1.442695, %v716_v0  ;;  %v293_v22 = vand.u32 2147483647, %v716_v0 }
  0x80   :  { %v339_v3 = vrot.slane %v338_v1, 4  ;;  %v331_v4 = vsel %vm330_vm0, %v719_v2, -inf  ;;  %v471_v18 = vmul.f32 -1.442695, %v719_v2  ;;  %v292_v24 = vand.u32 2147483647, %v719_v2 }
  0x81   :  { %v332_v5 = vrot.slane %v331_v4, 4  ;;  %480 = vpow2.f32 %v472_v15  ;;  %v295_v26 = vsub.f32 0.0, %v293_v22  ;;  %vm460_vm0 = vcmask 1044480  }
  0x82   :  { %v340_v6 = vmax.f32 %v338_v1, %v339_v3  ;;  %482 = vpow2.f32 %v471_v18  ;;  %v294_v28 = vsub.f32 0.0, %v292_v24 }
  0x83   :  { %v333_v7 = vmax.f32 %v331_v4, %v332_v5  ;;  %v298_v31 = vmul.f32 1.442695, %v295_v26 }
  0x84   :  { %v341_v8 = vrot.slane %v340_v6, 2  ;;  %v296_v33 = vmul.f32 1.442695, %v294_v28 }
  0x85   :  { %v334_v9 = vrot.slane %v333_v7, 2 }
  0x86   :  { %v342_v10 = vmax.f32 %v340_v6, %v341_v8  ;;  %v395_v8 = vrot.slane %v716_v0, 5 }
  0x87   :  { %v335_v11 = vmax.f32 %v333_v7, %v334_v9 }
  0x88   :  { %v343_v12 = vrot.slane %v342_v10, 1 }
  0x89   :  { %v336_v13 = vrot.slane %v335_v11, 1 }
  0x8a   :  { %v722_v14 = vmax.f32 %v342_v10, %v343_v12  ;;  %v394_v10 = vrot.slane %v719_v2, 5 }
  0x8b   :  { %v725_v16 = vmax.f32 %v335_v11, %v336_v13 }
  0x8c   :  { %v346_v17 = vsub.f32 %v716_v0, %v722_v14 }
  0x8d   :  { %v345_v19 = vsub.f32 %v719_v2, %v725_v16 }
  0x8e   :  { %v349_v20 = vmul.f32 1.442695, %v346_v17  ;;  %v481_v23 = vpop.eup %480 }
  0x8f   :  { %v347_v21 = vmul.f32 1.442695, %v345_v19  ;;  %v483_v25 = vpop.eup %482  ;;  %v222_v27 = vadd.f32 1.0, %v481_v23 }
  0x90   :  { %484 = vpow2.f32 %v349_v20  ;;  %v221_v30 = vadd.f32 1.0, %v483_v25 }
  0x91   :  { %486 = vpow2.f32 %v347_v21 }
  0x92   :  { %488 = vrcp.f32 %v222_v27 }
  0x93   :  { %490 = vrcp.f32 %v221_v30 }
  0x94   :  { %492 = vpow2.f32 %v298_v31 }
  0x95   :  { %494 = vpow2.f32 %v296_v33 }
  0x9d   :  { %v485_v29 = vpop.eup %484 }
  0x9e   :  { %v487_v32 = vpop.eup %486  ;;  %v354_v34 = vrot.slane %v485_v29, 5 }
  0x9f   :  { %v353_v35 = vrot.slane %v487_v32, 5  ;;  %v489_v45 = vpop.eup %488 }
  0xa0   :  { %v365_v36 = vsel %vm357_vm1, %v354_v34, 0.0  ;;  %v491_v48 = vpop.eup %490 }
  0xa1   :  { %v358_v38 = vsel %vm357_vm1, %v353_v35, 0.0  ;;  %v366_v39 = vrot.slane %v365_v36, 4  ;;  %v744_v54 = vpop.eup %492 }
  0xa2   :  { %v359_v41 = vrot.slane %v358_v38, 4  ;;  %v747_v56 = vpop.eup %494  ;;  %v309_v62 = vadd.f32 1.0, %v744_v54  ;;  %v312_v21 = vmul.f32 -0.5, %v744_v54  ;;  %v315_v31 = vand.u32 2147483647, %v744_v54 }
  0xa3   :  { %v367_v44 = vadd.f32 %v366_v39, %v365_v36  ;;  %v300_v3 = vadd.f32 1.0, %v747_v56  ;;  %v303_v28 = vmul.f32 -0.5, %v747_v56  ;;  %v306_v29 = vand.u32 2147483647, %v747_v56 }
  0xa4   :  { %v360_v49 = vadd.f32 %v359_v41, %v358_v38  ;;  %v313_v35 = vadd.f32 1.0, %v312_v21  ;;  %vm771_vm7 = vcmp.lt.f32.partialorder %v315_v31, 0.0004427343 }
  0xa5   :  { %v368_v52 = vrot.slane %v367_v44, 2  ;;  %vm767_vm6 = vcmp.lt.f32.partialorder %v306_v29, 0.0004427343 }
  0xa6   :  { %v361_v60 = vrot.slane %v360_v49, 2 }
  0xa7   :  { %v369_v63 = vadd.f32 %v368_v52, %v367_v44 }
  0xa8   :  { %v362_v7 = vadd.f32 %v361_v60, %v360_v49 }
  0xa9   :  { %v370_v9 = vrot.slane %v369_v63, 1 }
  0xaa   :  { %v363_v17 = vrot.slane %v362_v7, 1 }
  0xab   :  { %v371_v22 = vadd.f32 %v370_v9, %v369_v63 }
  0xac   :  { %v364_v30 = vadd.f32 %v363_v17, %v362_v7 }
  0xbe   :  { %v736_v40 = vpop.trf.xlu1 }
  0xbf   :  { %v248_v43 = vadd.f32 1e-09, %v736_v40  ;;  %v475_v46 = vtrunc.f32 %v736_v40  ;;  %v741_v47 = vpop.trf.xlu0  ;;  %v227_v57 = vsub.f32 %v491_v48, %v736_v40  ;;  %vm203_vm11 = vcmp.gt.f32.partialorder %v736_v40, 0.0 }
  0xc0   :  { %v228_v53 = vsub.f32 %v489_v45, %v741_v47  ;;  %v249_v55 = vadd.f32 1e-09, %v741_v47  ;;  %v477_v59 = vtrunc.f32 %v741_v47  ;;  %v291_v45 = vmax.f32 %v716_v0, 0.0 }
  0xc1   :  { %496 = vlog2.f32 %v248_v43  ;;  %v476_v51 = vcvt.f32.s32 %v475_v46  ;;  %v229_v4 = vmul.f32 %v227_v57, %v227_v57  ;;  %v420_v46 = vand.u32 127, %v380_v37 }
  0xc2   :  { %v230_v58 = vmul.f32 %v228_v53, %v228_v53  ;;  %498 = vlog2.f32 %v249_v55  ;;  %v478_v1 = vcvt.f32.s32 %v477_v59  ;;  %v314_v37 = vmul.f32 %v744_v54, %v313_v35 }
  0xc3   :  { %v385_v61 = vrot.slane %v476_v51, %v384_v50  ;;  %500 = vlog2.f32 %v309_v62  ;;  %v232_v13 = vsel %vm231_vm2, %v229_v4, 0.0  ;;  %vm204_vm9 = vcmp.gt.f32.partialorder %v741_v47, 0.0 }
  0xc4   :  { %v239_v5 = vsel %vm231_vm2, %v230_v58, 0.0  ;;  %v389_v6 = vrot.slane %v478_v1, %v384_v50  ;;  %502 = vlog2.f32 %v300_v3  ;;  %v233_v23 = vrot.slane %v232_v13, 4 }
  0xc5   :  { %vm390_vm3 = vcmp.eq.s32.totalorder %v381_v42, %v385_v61  ;;  %v240_v11 = vrot.slane %v239_v5, 4  ;;  %504 = vlog2.f32 %v371_v22  ;;  %v304_v50 = vadd.f32 1.0, %v303_v28 }
  0xc6   :  { %vm391_vm4 = vcmp.eq.s32.totalorder %v381_v42, %v389_v6  ;;  %v398_v18 = vsel %vm390_vm3, %v394_v10, 0.0  ;;  %v234_v36 = vadd.f32 %v233_v23, %v232_v13  ;;  %506 = vlog2.f32 %v364_v30 }
  0xc7   :  { %v399_v12 = vsel %vm391_vm4, %v395_v8, 0.0  ;;  %v241_v24 = vadd.f32 %v240_v11, %v239_v5  ;;  %v400_v26 = vsel %vm357_vm1, %v398_v18, 0.0  ;;  %v305_v6 = vmul.f32 %v747_v56, %v304_v50 }
  0xc8   :  { %v407_v19 = vsel %vm357_vm1, %v399_v12, 0.0  ;;  %v401_v38 = vrot.slane %v400_v26, 4  ;;  %v235_v61 = vrot.slane %v234_v36, 2  ;;  %v319_v8 = vmul.f32 %v741_v47, %v716_v0 }
  0xc9   :  { %v408_v27 = vrot.slane %v407_v19, 4  ;;  %v242_v39 = vrot.slane %v241_v24, 2  ;;  %v318_v10 = vmul.f32 %v736_v40, %v719_v2  ;;  %v782_v18 = vadd.s32 128, %v420_v46 }
  0xca   :  { %v402_v57 = vadd.f32 %v401_v38, %v400_v26  ;;  %v236_v12 = vadd.f32 %v235_v61, %v234_v36  ;;  %v290_v56 = vmax.f32 %v719_v2, 0.0  ;;  %v321_v22 = vsub.f32 %v291_v45, %v319_v8 }
  0xcb   :  { %v409_v44 = vadd.f32 %v408_v27, %v407_v19  ;;  %v243_v62 = vadd.f32 %v242_v39, %v241_v24  ;;  %vm210_vm10 = vcmp.eq.f32.partialorder %v741_v47, 0.0  ;;  %vm209_vm12 = vcmp.eq.f32.partialorder %v736_v40, 0.0 }
  0xcc   :  { %v403_v11 = vrot.slane %v402_v57, 2  ;;  %v237_v27 = vrot.slane %v236_v12, 1  ;;  %v320_v29 = vsub.f32 %v290_v56, %v318_v10  ;;  %vm426_vm13 = vcmp.lt.s32.totalorder %v782_v18, 160 }
  0xcd   :  { %v410_v63 = vrot.slane %v409_v44, 2  ;;  %v244_v19 = vrot.slane %v243_v62, 1 }
  0xce   :  { %v497_v15 = vpop.eup %496  ;;  %v404_v24 = vadd.f32 %v403_v11, %v402_v57 }
  0xcf   :  { %v251_v20 = vmul.f32 0.6931472, %v497_v15  ;;  %v499_v32 = vpop.eup %498  ;;  %v411_v17 = vadd.f32 %v410_v63, %v409_v44 }
  0xd0   :  { %v253_v41 = vmul.f32 0.6931472, %v499_v32  ;;  %v501_v53 = vpop.eup %500  ;;  %v405_v38 = vrot.slane %v404_v24, 1 }
  0xd1   :  { %v254_v25 = vsub.f32 %v719_v2, %v251_v20  ;;  %v503_v60 = vpop.eup %502  ;;  %v311_v7 = vmul.f32 0.6931472, %v501_v53  ;;  %v412_v30 = vrot.slane %v411_v17, 1  ;;  %v245_v2 = vadd.f32 %v244_v19, %v243_v62 }
  0xd2   :  { %v255_v48 = vsub.f32 %v716_v0, %v253_v41  ;;  %v302_v9 = vmul.f32 0.6931472, %v503_v60  ;;  %v505_v0 = vpop.eup %504  ;;  %v238_v41 = vadd.f32 %v237_v27, %v236_v12  ;;  %v406_v57 = vadd.f32 %v405_v38, %v404_v24 }
  0xd3   :  { %v256_v33 = vand.u32 2147483647, %v254_v25  ;;  %v260_v34 = vmul.f32 0.5, %v254_v25  ;;  %v507_v32 = vpop.eup %506  ;;  %v375_v35 = vmul.f32 0.6931472, %v505_v0  ;;  %v413_v46 = vadd.f32 %v412_v30, %v411_v17 }
  0xd4   :  { %v257_v58 = vand.u32 2147483647, %v255_v48  ;;  %v261_v59 = vmul.f32 0.5, %v255_v48  ;;  %v308_v23 = vsel %vm767_vm6, %v305_v6, %v302_v9  ;;  %v373_v47 = vmul.f32 0.6931472, %v507_v32 }
  0xd5   :  { %vm258_vm5 = vcmp.lt.f32.partialorder %v256_v33, 1.0  ;;  %v262_v42 = vmul.f32 %v260_v34, %v254_v25  ;;  %v473_v43 = vadd.f32 -0.5, %v256_v33  ;;  %v317_v25 = vsel %vm771_vm7, %v314_v37, %v311_v7 }
  0xd6   :  { %vm259_vm8 = vcmp.lt.f32.partialorder %v257_v58, 1.0  ;;  %v263_v3 = vmul.f32 %v261_v59, %v255_v48  ;;  %v474_v4 = vadd.f32 -0.5, %v257_v58  ;;  %v327_v34 = vadd.f32 %v317_v25, %v291_v45 }
  0xd7   :  { %v266_v49 = vsel %vm258_vm5, %v262_v42, %v473_v43  ;;  %v323_v36 = vadd.f32 %v321_v22, %v317_v25  ;;  %v508_v42 = vmov 0.0   ;;  %v322_v48 = vadd.f32 %v320_v29, %v308_v23 }
  0xd8   :  { %v270_v55 = vrot.slane %v266_v49, 2  ;;  %v267_v54 = vsel %vm259_vm8, %v263_v3, %v474_v4  ;;  %v468_v43 = vsel %vm204_vm9, 1.0, %v508_v42  ;;  %v470_v44 = vsel %vm210_vm10, 1.0, %v508_v42 }
  0xd9   :  { %v271_v15 = vrot.slane %v267_v54, 2  ;;  %v247_v49 = vmul.f32 %v468_v43, %v245_v2  ;;  %v467_v51 = vsel %vm203_vm11, 1.0, %v508_v42  ;;  %v377_v45 = vadd.f32 %v375_v35, %v722_v14 }
  0xda   :  { %v274_v1 = vsel %vm231_vm2, %v270_v55, 0.0  ;;  %v325_v53 = vmul.f32 %v468_v43, %v323_v36  ;;  %v469_v55 = vsel %vm209_vm12, 1.0, %v508_v42  ;;  %v329_v59 = vmul.f32 %v470_v44, %v327_v34 }
  0xdb   :  { %v275_v5 = vrot.slane %v274_v1, 4  ;;  %v281_v21 = vsel %vm231_vm2, %v271_v15, 0.0  ;;  %v246_v60 = vmul.f32 %v467_v51, %v238_v41  ;;  %v326_v61 = vadd.f32 %v308_v23, %v290_v56 }
  0xdc   :  { %v282_v26 = vrot.slane %v281_v21, 4  ;;  %v415_v37 = vsub.f32 %v377_v45, %v413_v46  ;;  %v324_v62 = vmul.f32 %v467_v51, %v322_v48  ;;  %v376_v63 = vadd.f32 %v373_v47, %v725_v16 }
  0xdd   :  { %v276_v13 = vadd.f32 %v275_v5, %v274_v1  ;;  %v428_v3 = vsel %vm426_vm13, %v247_v49, 0.0  ;;  %v328_v4 = vmul.f32 %v469_v55, %v326_v61  ;;  %v432_v40 = vsel %vm426_vm13, %v325_v53, 0.0 }
  0xde   :  { %v283_v31 = vadd.f32 %v282_v26, %v281_v21  ;;  %v414_v5 = vsub.f32 %v376_v63, %v406_v57  ;;  %v434_v7 = vsel %vm426_vm13, %v329_v59, 0.0  ;;  %v417_v8 = vmul.f32 %v468_v43, %v415_v37 }
  0xdf   :  { %v277_v20 = vrot.slane %v276_v13, 2  ;;  %v437_v9 = vadd.f32 %v428_v3, %v246_v60  ;;  %v439_v16 = vadd.f32 %v432_v40, %v324_v62  ;;  %v440_v54 = vadd.f32 %v434_v7, %v328_v4 }
  0xe0   :  { %v284_v39 = vrot.slane %v283_v31, 2  ;;  %v416_v12 = vmul.f32 %v467_v51, %v414_v5 }
  0xe1   :  { %v278_v28 = vadd.f32 %v277_v20, %v276_v13  ;;  %v436_v13 = vsel %vm426_vm13, %v417_v8, 0.0  ;;  %v443_v15 = vrot.slane %v437_v9, 4  ;;  %v449_v19 = vrot.slane %v439_v16, 2 }
  0xe2   :  { %v285_v50 = vadd.f32 %v284_v39, %v283_v31  ;;  %v452_v20 = vrot.slane %v440_v54, 1  ;;  %v441_v21 = vadd.f32 %v436_v13, %v416_v12 }
  0xe3   :  { %v279_v33 = vrot.slane %v278_v28, 1 }
  0xe4   :  { %v286_v58 = vrot.slane %v285_v50, 1 }
  0xe5   :  { %v280_v52 = vadd.f32 %v279_v33, %v278_v28 }
  0xe6   :  { %v287_v1 = vadd.f32 %v286_v58, %v285_v50 }
  0xe7   :  { %v288_v14 = vmul.f32 %v467_v51, %v280_v52 }
  0xe8   :  { %v289_v6 = vmul.f32 %v468_v43, %v287_v1 }
  0xea   :  { %v430_v10 = vsel %vm426_vm13, %v289_v6, 0.0 }
  0xeb   :  { %v438_v11 = vadd.f32 %v430_v10, %v288_v14 }
  0xed   :  { %v446_v17 = vrot.slane %v438_v11, 3 }
  0xef   :  { %v455_v56 = vsel %vm454_vm14, %v443_v15, %v446_v17 }
  0xf0   :  { %v456_v22 = vsel %vm231_vm2, %v455_v56, %v449_v19 }
  0xf1   :  { %v457_v0 = vsel %vm357_vm1, %v456_v22, %v452_v20 }
  0xf2   :  { %v459_v23 = vsel %vm458_vm15, %v457_v0, %v441_v21 }
  0xf3   :  { %v461_v24 = vsel %vm460_vm0, %v459_v23, 0.0 }
  0xf4   :  { %462 = vst [vmem:[%s816_s2] sm:$0xff] %v461_v24 }

</bundles_post_ra>
